<compile_context>
chip_gen: v7x
topology: tpu7x:2x2x1
jax: 0.10.0
libtpu: 0.0.40
codegen_flags: <defaults>
</compile_context>

<pallas_src>
import math

import numpy as np
import jax
import jax.numpy as jnp
from jax.experimental import pallas as pl
from jax.experimental.pallas import tpu as pltpu


# ----------------------------------------------------------------------------
# DCT filter construction (same math as the PyTorch module's get_dct_filter)
# ----------------------------------------------------------------------------
def get_freq_indices(method):
    assert method.startswith("top")
    num_freq = int(method[3:])
    all_top_indices_x = [0, 0, 6, 0, 0, 1, 1, 4, 5, 1, 3, 0, 0, 0, 3, 2,
                         4, 6, 3, 5, 5, 2, 6, 5, 5, 3, 3, 4, 2, 2, 6, 1]
    all_top_indices_y = [0, 1, 0, 5, 2, 0, 2, 0, 0, 6, 0, 4, 6, 3, 5, 2,
                         6, 3, 3, 3, 5, 1, 1, 2, 4, 2, 1, 1, 3, 0, 5, 3]
    return all_top_indices_x[:num_freq], all_top_indices_y[:num_freq]


def _build_filter(pos, freq, POS):
    result = math.cos(math.pi * freq * (pos + 0.5) / POS) / math.sqrt(POS)
    if freq == 0:
        return result
    return result * math.sqrt(2)


def make_dct_filter(tile_size_x, tile_size_y, mapper_x, mapper_y, channel):
    assert len(mapper_x) == len(mapper_y)
    assert channel % len(mapper_x) == 0
    c_part = channel // len(mapper_x)
    f = np.zeros((channel, tile_size_x, tile_size_y), dtype=np.float32)
    for i, (u_x, v_y) in enumerate(zip(mapper_x, mapper_y)):
        for t_x in range(tile_size_x):
            for t_y in range(tile_size_y):
                f[i * c_part:(i + 1) * c_part, t_x, t_y] = (
                    _build_filter(t_x, u_x, tile_size_x)
                    * _build_filter(t_y, v_y, tile_size_y))
    return f


# ----------------------------------------------------------------------------
# Pallas kernel
# ----------------------------------------------------------------------------
def _dct_layer_kernel(x_ref, w_ref, o_ref):
    # x_ref: (Nb, C, HW) VMEM   input block (lane-dense last dim)
    # w_ref: (C, HW)     VMEM   DCT filter (constant across grid steps)
    # o_ref: (Nb, 2, HW) VMEM   [mean over C, max over C]
    xw = x_ref[...].astype(jnp.float32) * w_ref[...].astype(jnp.float32)[None]
    avg = jnp.mean(xw, axis=1)          # (Nb, HW)  cross-sublane reduce (XLU)
    mx = jnp.max(xw, axis=1)            # (Nb, HW)
    # Single full-tile store; no partial sublane writes.
    o_ref[...] = jnp.stack([avg, mx], axis=1).astype(o_ref.dtype)


def _choose_block_n(N, per_sample_bytes, target_bytes=4 << 20):
    """Largest divisor of N whose block fits the byte budget while keeping
    at least 2 grid steps (so a dual-TC chip gets work on both cores)."""
    best = 1
    for nb in range(1, N + 1):
        if N % nb != 0 or nb * per_sample_bytes > target_bytes:
            continue
        if N // nb >= 2 or N == 1:
            best = nb
    return best


def dct_layer(x, dct_weight):
    """x: (N, C, H, W); dct_weight: (C, H, W)  ->  (N, 2, H, W)."""
    N, C, H, W = x.shape
    assert dct_weight.shape == (C, H, W)
    HW = H * W

    # Lane-dense layout: operate on (C, H*W) slabs.
    x2 = x.reshape(N, C, HW)
    w2 = dct_weight.reshape(C, HW).astype(jnp.float32)

    itemsize = jnp.dtype(x.dtype).itemsize
    per_sample_bytes = (C * HW + 2 * HW) * itemsize
    Nb = _choose_block_n(N, per_sample_bytes)
    grid = (N // Nb,)

    # Explicit VMEM budget: x/out double-buffered + resident DCT filter.
    vmem_est = (2 * Nb * C * HW * itemsize          # x (double buffered)
                + 2 * Nb * 2 * HW * itemsize        # out (double buffered)
                + 2 * C * HW * 4)                   # DCT filter
    compiler_kwargs = dict(dimension_semantics=("parallel",))
    if vmem_est > (24 << 20):
        compiler_kwargs["vmem_limit_bytes"] = min(int(vmem_est * 1.5), 100 << 20)

    out = pl.pallas_call(
        _dct_layer_kernel,
        out_shape=jax.ShapeDtypeStruct((N, 2, HW), x.dtype),
        grid_spec=pltpu.PrefetchScalarGridSpec(
            num_scalar_prefetch=0,
            grid=grid,
            in_specs=[
                pl.BlockSpec((Nb, C, HW), lambda n: (n, 0, 0)),
                pl.BlockSpec((C, HW), lambda n: (0, 0)),
            ],
            out_specs=pl.BlockSpec((Nb, 2, HW), lambda n: (n, 0, 0)),
        ),
        compiler_params=pltpu.CompilerParams(**compiler_kwargs),
    )(x2, w2)
    return out.reshape(N, 2, H, W)


# ----------------------------------------------------------------------------
# Pure-JAX reference (for correctness check)
# ----------------------------------------------------------------------------
def reference(x, dct_weight):
    xw = x * dct_weight[None]
    avg = jnp.mean(xw, axis=1, keepdims=True)
    mx = jnp.max(xw, axis=1, keepdims=True)
    return jnp.concatenate([avg, mx], axis=1)


if __name__ == "__main__":
    # Small shapes consistent with the module: channel % num_freq == 0.
    N, C, H, W = 2, 16, 16, 16
    freq_sel = "top8"

    # Standard usage scales the 7x7 frequency indices to the DCT tile size.
    mapper_x, mapper_y = get_freq_indices(freq_sel)
    mapper_x = [mx * (H // 7) for mx in mapper_x]
    mapper_y = [my * (W // 7) for my in mapper_y]

    key = jax.random.PRNGKey(0)
    x = jax.random.normal(key, (N, C, H, W), dtype=jnp.float32)
    dct_weight = jnp.asarray(make_dct_filter(H, W, mapper_x, mapper_y, C))  # (C, H, W)

    out = dct_layer(x, dct_weight)
    out = jax.block_until_ready(out)

    ref = reference(x, dct_weight)
    assert out.shape == (N, 2, H, W) and out.dtype == x.dtype
    assert jnp.allclose(out, ref, atol=1e-5, rtol=1e-5), float(
        jnp.max(jnp.abs(out - ref)))

    print("KERNEL_OK")
</pallas_src>

<mosaic_0001>
module attributes {stable_mosaic.version = 11 : i64} {
  func.func @_dct_layer_kernel(%arg0: i32, %arg1: memref<1x16x256xf32, #tpu.memory_space<vmem>>, %arg2: memref<16x256xf32, #tpu.memory_space<vmem>>, %arg3: memref<1x2x256xf32, #tpu.memory_space<vmem>>) attributes {dimension_semantics = [#tpu.dimension_semantics<parallel>], iteration_bounds = array<i64: 2>, scalar_prefetch = 0 : i64, scratch_operands = 0 : i64, tpu.core_type = #tpu.core_type<tc>, window_params = [{transform_indices = @transform_0, window_bounds = array<i64: 1, 16, 256>}, {pipeline_mode = #tpu.pipeline_mode<synchronous>, transform_indices = @transform_1, window_bounds = array<i64: 16, 256>}, {transform_indices = @transform_2, window_bounds = array<i64: 1, 2, 256>}]} {
    %c0 = arith.constant 0 : index
    %c0_0 = arith.constant 0 : index
    %c0_1 = arith.constant 0 : index
    %0 = vector.load %arg1[%c0, %c0_0, %c0_1] : memref<1x16x256xf32, #tpu.memory_space<vmem>>, vector<1x16x256xf32>
    %c0_2 = arith.constant 0 : index
    %c0_3 = arith.constant 0 : index
    %1 = vector.load %arg2[%c0_2, %c0_3] : memref<16x256xf32, #tpu.memory_space<vmem>>, vector<16x256xf32>
    %2 = vector.shape_cast %1 : vector<16x256xf32> to vector<1x16x256xf32>
    %3 = arith.mulf %0, %2 : vector<1x16x256xf32>
    %cst = arith.constant dense<0.000000e+00> : vector<1x256xf32>
    %4 = vector.multi_reduction <add>, %3, %cst [1] : vector<1x16x256xf32> to vector<1x256xf32>
    %cst_4 = arith.constant 1.600000e+01 : f32
    %5 = vector.broadcast %cst_4 : f32 to vector<1x256xf32>
    %6 = arith.divf %4, %5 : vector<1x256xf32>
    %cst_5 = arith.constant dense<0xFF800000> : vector<1x256xf32>
    %7 = vector.multi_reduction <maximumf>, %3, %cst_5 [1] : vector<1x16x256xf32> to vector<1x256xf32>
    %8 = vector.shape_cast %6 : vector<1x256xf32> to vector<1x1x256xf32>
    %9 = vector.shape_cast %7 : vector<1x256xf32> to vector<1x1x256xf32>
    %10 = tpu.concatenate %8, %9 in 1 : vector<1x1x256xf32>, vector<1x1x256xf32> -> vector<1x2x256xf32>
    %c0_6 = arith.constant 0 : index
    %c0_7 = arith.constant 0 : index
    %c0_8 = arith.constant 0 : index
    %11 = vector.load %arg3[%c0_6, %c0_7, %c0_8] : memref<1x2x256xf32, #tpu.memory_space<vmem>>, vector<1x2x256xf32>
    tpu.vector_store %arg3[%c0_6, %c0_7, %c0_8], %10 {strides = array<i32>} : memref<1x2x256xf32, #tpu.memory_space<vmem>>, vector<1x2x256xf32>,
    return
  }
  func.func @transform_0(%arg0: i32) -> (i32, i32, i32) {
    %c0_i32 = arith.constant 0 : i32
    %c0_i32_0 = arith.constant 0 : i32
    %c0_i32_1 = arith.constant 0 : i32
    return %arg0, %c0_i32, %c0_i32_0 : i32, i32, i32
  }
  func.func @transform_1(%arg0: i32) -> (i32, i32) {
    %c0_i32 = arith.constant 0 : i32
    %c0_i32_0 = arith.constant 0 : i32
    %c0_i32_1 = arith.constant 0 : i32
    return %c0_i32, %c0_i32_0 : i32, i32
  }
  func.func @transform_2(%arg0: i32) -> (i32, i32, i32) {
    %c0_i32 = arith.constant 0 : i32
    %c0_i32_0 = arith.constant 0 : i32
    %c0_i32_1 = arith.constant 0 : i32
    return %arg0, %c0_i32, %c0_i32_0 : i32, i32, i32
  }
}

</mosaic_0001>

<bundles_post_ra>
// kernel: tpu_custom_call.1
= control target key start
LH: loop header
LB: loop body
LE: loop exit
PB: predicated region body
PF: predicated region fallthrough
CT: control target
= control target key end

     0   :  { %7 = vsyncpa [#allocation3], 0  ;;  %s764_s0 = inlined_call_operand.hbm [shape: f32[2,16,256], index: 0, kind: input, shape index: {}]   ;;  %s765_s1 = inlined_call_operand.hbm [shape: f32[16,256], index: 1, kind: input, shape index: {}]   ;;  %s766_s2 = inlined_call_operand.hbm [shape: f32[2,2,256], index: 2, kind: output, shape index: {}]  }
   0x1   :  { %9 = vsyncpa [#allocation3 + $0x1], 0 }
   0x2   :  { %10 = vsyncpa [#allocation6], 0 }
   0x3   :  { %11 = vsyncpa [#allocation4], 0 }
   0x4   :  { %13 = vsyncpa [#allocation4 + $0x1], 0  ;;  %s558_s9 = smov 0   ;;  %s560_s10 = smov 0  }
   0x5   :  { %s562_s11 = smov 0   ;;  %s564_s12 = smov 0  }
   0x6 LB: > { %s579_s13 = sadd.s32 4294967295, %s536_s12   ;;  %s330_s14 = sadd.s32 4294967294, %s536_s12   ;;  %s536_s12 = sphi %s564_s12, %s786_s12   ;;  %s532_s11 = sphi %s562_s11, %s785_s11   ;;  %s528_s10 = sphi %s560_s10, %s784_s10   ;;  %s524_s9 = sphi %s558_s9, %s783_s9  }
   0x7   : > { %p39_p0 = scmp.ne.s32.totalorder %s528_s10, %s524_s9  ;;  %p767_p1 = scmp.eq.s32.totalorder %s579_s13, 0 }
   0x8   : > { %p90_p3 = scmp.eq.s32.totalorder %s330_s14, 1  ;;  %p331_p5 = scmp.ge.s32.totalorder %s536_s12, 1 }
   0x9   : > { %p588_p4 = por %p767_p1, %p39_p0  ;;  %p97_p7 = scmp.lt.s32.totalorder %s536_s12, 3 }
   0xa   : > { %p593_p6 = por %p90_p3, %p39_p0  ;;  %s538_s18 = smov [#allocation5]  }
   0xb   : > { %s770_s15 = scalar_select %p588_p4, 1, 0 }
   0xc   : > { %s771_s16 = scalar_select %p593_p6, 1, 0 }
   0xd   : > { %p598_p8 = pnand %p331_p5, %p97_p7  ;;  %s109_s19 = sshll.u32 %s538_s18, 4  ;;  %s602_s19 = int_to_ptr.vmem [resolvable:$true] %s109_s19 }
   0xe   : > { %s614_s21 = sadd.s32 1, %s536_s12   ;;  %s26_s22 = sadd.s32 1, %s532_s11 }
   0xf   : > { %s772_s17 = scalar_select %p598_p8, 1, 0 }
  0x10   : > { %p357_p9 = pneg %p598_p8  ;;  %s23_s23 = ssub.s32 %s536_s12, %s614_s21 }
  0x11   : > { %s408_s26 = scalar_lea.hbm %s765_s1, 512 }
  0x12   : > { %p609_p11 = pnand %p357_p9, %p767_p1  ;;  %p409_p12 = scmp.ne.s32.totalorder %s765_s1, %s408_s26 }
  0x13   : > { %p415_p5 = scmp.lt.u32.totalorder %s408_s26, %s765_s1 }
  0x14   : > { %p410_p13 = pneg %p609_p11 }
  0x16   : > { %p411_p0 = pnand %p410_p13, %p409_p12 }
  0x18   : > { %p412_p3 = pneg %p411_p0 }
  0x1a   : > { %p417_p7 = pnand %p415_p5, %p412_p3 }
  0x1c   : > { %420 = shalt.err (!%p417_p7)
}
  0x1d   : > { %s421_s3 = scalar_lea.vmem %s602_s19, 512  ;;  %p429_p2 = scmp.lt.s32.totalorder %s602_s19, %s602_s19 }
  0x1e   : > { %p422_p9 = scmp.ne.s32.totalorder %s602_s19, %s421_s3  ;;  %p430_p6 = scmp.lt.s32.totalorder %s421_s3, %s421_s3 }
  0x20   : > { %p424_p10 = pnand %p422_p9, %p410_p13  ;;  %p431_p4 = por %p430_p6, %p429_p2 }
  0x22   : > { %p425_p1 = pneg %p424_p10 }
  0x24   : > { %p432_p8 = pnand %p431_p4, %p425_p1 }
  0x26   : > { %435 = shalt.err (!%p432_p8)
}
  0x27   : > { %s539_s4 = smov 256   ;;  %s540_s5 = smov 16  }
  0x28   : > { %360 = dma.hbm_to_vmem [thread:$0]  (!%p609_p11), %s765_s1, 512, %s602_s19, [#allocation6], %s539_s4, %s539_s4, %s540_s5  }
  0x29   : > { %p24_p1 = scmp.eq.s32.totalorder %s23_s23, 0  ;;  %p33_p2 = scmp.ne.s32.totalorder %s532_s11, %s528_s10 }
  0x2a   : > { %p34_p4 = scmp.eq.s32.totalorder %s536_s12, 0  ;;  %p370_p6 = scmp.lt.s32.totalorder %s536_s12, 2 }
  0x2b   : > { %s648_s8 = scalar_select %p24_p1, %s532_s11, %s26_s22  }
  0x2c   : > { %p35_p8 = por %p34_p4, %p33_p2  ;;  %p774_p10 = scmp.eq.s32.totalorder %s579_s13, 1 }
  0x2d   : > { %s123_s18 = sand.u32 1, %s532_s11   ;;  %s347_s20 = sshll.u32 %s536_s12, 9 }
  0x2e   : > { %p652_p12 = por %p774_p10, %p33_p2  ;;  %s334_s24 = sshll.u32 %s123_s18, 5 }
  0x2f   : > { %s661_s27 = scalar_lea.hbm %s764_s0, %s347_s20  ;;  %s127_s19 = scalar_lea.vmem [#allocation2], %s334_s24 }
  0x30   : > { %s134_s22 = sshll.u32 %s127_s19, 4  ;;  %p663_p11 = pnand %p370_p6, %p35_p8  ;;  %s667_s22 = int_to_ptr.vmem [resolvable:$true] %s134_s22 }
  0x31   : > { %s669_s28 = scalar_lea.sflag [#allocation3], %s123_s18  ;;  %s436_s29 = scalar_lea.hbm %s661_s27, 512 }
  0x32   : > { %p437_p13 = scmp.ne.s32.totalorder %s661_s27, %s436_s29  ;;  %p438_p0 = pneg %p663_p11 }
  0x33   : > { %s441_s6 = scalar_lea.hbm %s764_s0, 1024  ;;  %p442_p7 = scmp.lt.u32.totalorder %s661_s27, %s764_s0 }
  0x34   : > { %p439_p3 = pnand %p438_p0, %p437_p13  ;;  %p443_p9 = scmp.lt.u32.totalorder %s441_s6, %s436_s29 }
  0x35   : > { %p445_p2 = scmp.lt.u32.totalorder %s436_s29, %s661_s27 }
  0x36   : > { %p440_p5 = pneg %p439_p3  ;;  %p444_p1 = por %p443_p9, %p442_p7 }
  0x38   : > { %p446_p4 = por %p445_p2, %p444_p1 }
  0x3a   : > { %p447_p6 = pnand %p446_p4, %p440_p5 }
  0x3c   : > { %450 = shalt.err (!%p447_p6)
}
  0x3d   : > { %s451_s18 = scalar_lea.vmem %s667_s22, 512  ;;  %s541_s24 = smov [#allocation2]  }
  0x3e   : > { %p452_p8 = scmp.ne.s32.totalorder %s667_s22, %s451_s18  ;;  %s456_s25 = sshll.u32 %s541_s24, 4  ;;  %s457_s25 = int_to_ptr.vmem [resolvable:$false] %s456_s25 }
  0x3f   : > { %s458_s26 = scalar_lea.vmem %s457_s25, 1024  ;;  %p459_p3 = scmp.lt.s32.totalorder %s667_s22, %s457_s25 }
  0x40   : > { %p454_p10 = pnand %p452_p8, %p438_p0  ;;  %p460_p7 = scmp.lt.s32.totalorder %s458_s26, %s451_s18 }
  0x42   : > { %p455_p13 = pneg %p454_p10  ;;  %p461_p9 = por %p460_p7, %p459_p3 }
  0x44   : > { %p462_p1 = pnand %p461_p9, %p455_p13 }
  0x46   : > { %465 = shalt.err (!%p462_p1)
}
  0x47   : > { %364 = dma.hbm_to_vmem [thread:$0]  (!%p663_p11), %s661_s27, 512, %s667_s22, %s669_s28, %s539_s4, %s539_s4, %s540_s5  }
  0x48   : > { %p777_p0 = scmp.ne.s32.totalorder %s772_s17, 0 }
  0x49   : > { %s703_s19 = sand.u32 (!%p777_p0), 1, %s528_s10   ;;  %p778_p5 = scmp.ne.s32.totalorder (!%p777_p0), %s770_s15, 0 }
  0x4a   : > { %146 = sbr.rel (%p777_p0) target bundleno = 123 (0x7b), region = 28  ;;  %s338_s29 = sshll.u32 (!%p777_p0), %s703_s19, 5 }
  0x4b   : > { %s149_s30 = scalar_lea.sflag (!%p777_p0), [#allocation3], %s703_s19  ;;  %s152_s3 = scalar_lea.vmem (!%p777_p0), [#allocation2], %s338_s29 }
  0x51   : > { %511 = dma.done.wait (%p778_p5), %s149_s30, 512  }
  0x52   : > { %513 = vsyncadd (%p778_p5), %s149_s30, 4294966784  ;;  %p779_p2 = scmp.eq.s32.totalorder %s579_s13, 0 }
  0x54   : > { %515 = dma.done.wait (%p779_p2), [#allocation6], 512   ;;  %p780_p11 = pmov %p779_p2 }
  0x55   : > { %v177_v0 = vld [vmem:[%s152_s3] sm:$0xff]  ;;  %v178_v1 = vld [vmem:[%s152_s3 + $0x8] sm:$0xff]  ;;  %v179_v2 = vld [vmem:[%s152_s3 + $0x10] sm:$0xff]  ;;  %s340_s15 = sshll.u32 %s703_s19, 2  ;;  %vm220_vm0 = vcmask 1040384   ;;  %s348_s5 = sshll.u32 %s579_s13, 6 }
  0x56   : > { %517 = vsyncadd (%p780_p11), [#allocation6], 4294966784  ;;  %v180_v3 = vld [vmem:[%s152_s3 + $0x18] sm:$0xff]  ;;  %v181_v4 = vld [vmem:[#allocation5] sm:$0xff]  ;;  %s176_s17 = scalar_lea.vmem [#allocation7], %s340_s15  ;;  %s722_s23 = scalar_lea.hbm %s766_s2, %s348_s5 }
  0x57   : > { %v182_v5 = vld [vmem:[#allocation5 + $0x8] sm:$0xff]  ;;  %v183_v6 = vld [vmem:[#allocation5 + $0x10] sm:$0xff]  ;;  %v184_v7 = vld [vmem:[#allocation5 + $0x18] sm:$0xff]  ;;  %v185_v8 = vmul.f32 %v181_v4, %v177_v0  ;;  %s250_s4 = sshll.u32 %s176_s17, 4  ;;  %s236_s28 = scalar_lea.sflag [#allocation4], %s703_s19  ;;  %s717_s4 = int_to_ptr.vmem [resolvable:$true] %s250_s4 }
  0x58   : > { %v186_v9 = vmul.f32 %v182_v5, %v178_v1  ;;  %v187_v10 = vmul.f32 %v183_v6, %v179_v2  ;;  %v188_v11 = vmul.f32 %v184_v7, %v180_v3  ;;  %s466_s6 = scalar_lea.vmem %s717_s4, 64  ;;  %s542_s13 = smov [#allocation7]  }
  0x59   : > { %p467_p4 = scmp.ne.s32.totalorder %s717_s4, %s466_s6  ;;  %s470_s7 = sshll.u32 %s542_s13, 4  ;;  %s471_s7 = int_to_ptr.vmem [resolvable:$false] %s470_s7 }
  0x5a   : > { %v189_v12 = vadd.f32 %v187_v10, %v185_v8  ;;  %v196_v13 = vadd.f32 %v188_v11, %v186_v9  ;;  %v206_v14 = vmax.f32 %v185_v8, %v187_v10  ;;  %v213_v15 = vmax.f32 %v186_v9, %v188_v11  ;;  %s472_s20 = scalar_lea.vmem %s471_s7, 128  ;;  %p473_p10 = scmp.lt.s32.totalorder %s717_s4, %s471_s7 }
  0x5b   : > { %p468_p6 = pnand %p467_p4, %p652_p12  ;;  %p474_p13 = scmp.lt.s32.totalorder %s472_s20, %s466_s6 }
  0x5c   : > { %v190_v16 = vrot.slane %v189_v12, 4  ;;  %v197_v17 = vrot.slane %v196_v13, 4  ;;  %v207_v18 = vrot.slane %v206_v14, 4  ;;  %v214_v19 = vrot.slane %v213_v15, 4 }
  0x5d   : > { %p469_p8 = pneg %p468_p6  ;;  %p475_p3 = por %p474_p13, %p473_p10 }
  0x5e   : > { %v191_v20 = vadd.f32 %v190_v16, %v189_v12  ;;  %v198_v21 = vadd.f32 %v197_v17, %v196_v13  ;;  %v208_v22 = vmax.f32 %v206_v14, %v207_v18  ;;  %v215_v23 = vmax.f32 %v213_v15, %v214_v19 }
  0x5f   : > { %p476_p7 = pnand %p475_p3, %p469_p8 }
  0x60   : > { %v192_v24 = vrot.slane %v191_v20, 2  ;;  %v199_v25 = vrot.slane %v198_v21, 2  ;;  %v209_v26 = vrot.slane %v208_v22, 2  ;;  %v216_v27 = vrot.slane %v215_v23, 2 }
  0x62   : > { %v193_v28 = vadd.f32 %v192_v24, %v191_v20  ;;  %v200_v29 = vadd.f32 %v199_v25, %v198_v21  ;;  %v210_v30 = vmax.f32 %v208_v22, %v209_v26  ;;  %v217_v31 = vmax.f32 %v215_v23, %v216_v27 }
  0x64   : > { %v194_v32 = vrot.slane %v193_v28, 1  ;;  %v201_v33 = vrot.slane %v200_v29, 1  ;;  %v211_v34 = vrot.slane %v210_v30, 1  ;;  %v218_v35 = vrot.slane %v217_v31, 1 }
  0x66   : > { %v195_v36 = vadd.f32 %v194_v32, %v193_v28  ;;  %v202_v37 = vadd.f32 %v201_v33, %v200_v29  ;;  %v212_v38 = vmax.f32 %v210_v30, %v211_v34  ;;  %v219_v39 = vmax.f32 %v217_v31, %v218_v35 }
  0x68   : > { %v204_v40 = vmul.f32 0.0625, %v195_v36  ;;  %v205_v41 = vmul.f32 0.0625, %v202_v37 }
  0x6a   : > { %v221_v42 = vsel %vm220_vm0, %v204_v40, %v212_v38  ;;  %v222_v43 = vsel %vm220_vm0, %v205_v41, %v219_v39 }
  0x6b   : > { %v225_v44 = vcombine.low %v221_v42, %v222_v43 }
  0x6d   : > { %341 = vst.sshfl [vmem:[%s176_s17] sm:$0x33 pattern:$0x76325410] %v225_v44 }
  0x6e   : > { %479 = shalt.err (!%p476_p7)
}
  0x6f   : > { %s480_s18 = scalar_lea.hbm %s722_s23, 64  ;;  %s484_s26 = scalar_lea.hbm %s766_s2, 128 }
  0x70   : > { %p481_p9 = scmp.ne.s32.totalorder %s722_s23, %s480_s18  ;;  %p485_p5 = scmp.lt.u32.totalorder %s722_s23, %s766_s2 }
  0x71   : > { %p486_p2 = scmp.lt.u32.totalorder %s484_s26, %s480_s18  ;;  %p488_p4 = scmp.lt.u32.totalorder %s480_s18, %s722_s23 }
  0x72   : > { %p482_p1 = pnand %p481_p9, %p652_p12 }
  0x73   : > { %p487_p11 = por %p486_p2, %p485_p5 }
  0x74   : > { %p483_p0 = pneg %p482_p1 }
  0x75   : > { %p489_p6 = por %p488_p4, %p487_p11 }
  0x77   : > { %p490_p8 = pnand %p489_p6, %p483_p0 }
  0x79   : > { %493 = shalt.err (!%p490_p8)
}
  0x7a   : > { %355 = dma.vmem_to_hbm [thread:$0]  (%p652_p12), %s717_s4, 64, %s722_s23, %s236_s28  }
  0x7b PF: > { %s262_s30 = sand.u32 1, %s524_s9   ;;  %p781_p10 = scmp.ne.s32.totalorder %s771_s16, 0 }
  0x7c   : > { %p782_p13 = scmp.ge.s32.totalorder %s536_s12, 2  ;;  %s263_s3 = scalar_lea.sflag [#allocation4], %s262_s30 }
  0x7e   : > { %p366_p3 = pnand %p782_p13, %p781_p10 }
  0x80   : > { %519 = dma.done.wait (!%p366_p3), %s263_s3, 64  }
  0x81   : > { %521 = vsyncadd (!%p366_p3), %s263_s3, 4294967232  ;;  %p16_p7 = scmp.ge.s32.totalorder %s614_s21, 4   ;;  %s783_s9 = smov %s528_s10 }
  0x82   : > { %s784_s10 = smov %s532_s11  ;;  %s785_s11 = smov %s648_s8 }
  0x83   : > { %s786_s12 = smov %s614_s21  ;;  %18 = sbr.rel (!%p16_p7) target bundleno = 6 (0x6), region = 77 }
  0x8a   :  { %268 = vsyncpa [#allocation3], 1 }
  0x8b   :  { %270 = vsyncpa [#allocation3 + $0x1], 1 }
  0x8c   :  { %271 = vsyncpa [#allocation6], 1 }
  0x8d   :  { %272 = vsyncpa [#allocation4], 1 }
  0x8e   :  { %274 = vsyncpa [#allocation4 + $0x1], 1 }

</bundles_post_ra>
